<compile_context>
chip_gen: v6e
topology: v6e:2x2x1
jax: 0.10.0
libtpu: 0.0.40
codegen_flags: <defaults>
</compile_context>

<pallas_src>
import functools

import jax
import jax.numpy as jnp
from jax import lax
from jax.experimental import pallas as pl
from jax.experimental.pallas import tpu as pltpu

_LANE = 128


def _round_up(x, m):
    return ((x + m - 1) // m) * m


@functools.lru_cache(maxsize=None)
def _vmem_budget_bytes():
    """Per-call VMEM budget: half of physical capacity, capped at 32 MiB."""
    try:
        info = pltpu.get_tpu_info()
        cap = int(getattr(info, "vmem_capacity_bytes", 64 << 20))
    except Exception:
        cap = 64 << 20  # conservative (v7x per-TC capacity)
    return max(min(cap // 2, 32 << 20), 8 << 20)


# --------------------------------------------------------------------------
# One-time parameter prep (call at init, NOT per forward pass).
# --------------------------------------------------------------------------
def prepare_qnetwork_params(weight, bias, *, compute_dtype=jnp.bfloat16):
    """weight: (action_dim, state_dim) PyTorch layout; bias: (action_dim,).

    Returns:
      w_pad: (state_dim, A_pad) in compute_dtype (pre-transposed, lane-padded)
      b_pad: (1, A_pad) float32
    A_pad is a multiple of 128 (256 when action_dim > 128, to fill the 2x256
    MXU N-dim on v6e/v7x).  Padded columns are zero, so padded Q outputs are
    exactly zero and can be dropped or masked.
    """
    action_dim, state_dim = weight.shape
    a_pad = _round_up(action_dim, 256 if action_dim > _LANE else _LANE)
    w_pad = jnp.zeros((state_dim, a_pad), compute_dtype)
    w_pad = w_pad.at[:, :action_dim].set(weight.T.astype(compute_dtype))
    b_pad = jnp.zeros((1, a_pad), jnp.float32)
    b_pad = b_pad.at[0, :action_dim].set(bias.astype(jnp.float32))
    return w_pad, b_pad


# --------------------------------------------------------------------------
# Kernels
# --------------------------------------------------------------------------
def _qnet_fwd_kernel(x_ref, w_ref, b_ref, o_ref):
    # bf16 MXU path with f32 accumulation; weight is already (S, A_pad).
    x = x_ref[...].astype(jnp.bfloat16)
    acc = jnp.dot(x, w_ref[...], preferred_element_type=jnp.float32)
    o_ref[...] = (acc + b_ref[...]).astype(o_ref.dtype)


def _qnet_greedy_kernel(x_ref, w_ref, b_ref, a_ref, *, action_dim):
    # Fused linear + per-row argmax over actions (epsilon-greedy action pick).
    x = x_ref[...].astype(jnp.bfloat16)
    q = jnp.dot(x, w_ref[...], preferred_element_type=jnp.float32) + b_ref[...]
    lane = lax.broadcasted_iota(jnp.int32, q.shape, 1)
    q = jnp.where(lane < action_dim, q, -jnp.inf)          # mask padded lanes
    row_max = jnp.max(q, axis=-1, keepdims=True)
    cand = jnp.where(q == row_max, lane, jnp.int32(2**30))  # first-max index
    a_ref[...] = jnp.min(cand, axis=-1, keepdims=True).astype(jnp.int32)


# --------------------------------------------------------------------------
# Tiling / call helpers
# --------------------------------------------------------------------------
def _pick_tm(batch, state_dim, a_pad, vmem_budget):
    # bf16 MXU feed prefers 16-row (sublane-packed) tiles; fall back to the
    # plain 8-row granularity only when the whole batch is smaller than that.
    gran = 16 if batch >= 16 else 8
    per_row = 2 * (state_dim + a_pad) * 4            # double-buffered f32 x + out
    fixed = state_dim * a_pad * 2 + 2 * a_pad * 4    # bf16 weight + f32 bias blocks
    tm_cap = max((vmem_budget - fixed) // per_row, gran)
    tm_cap = max((tm_cap // gran) * gran, gran)
    tm = min(1024, tm_cap)                           # 512-1024 rows = HBM sweet spot
    if batch > 64:
        # >= 2 grid steps so v7x's second TensorCore gets work on mid batches.
        tm = min(tm, _round_up(pl.cdiv(batch, 2), gran))
    tm = min(tm, _round_up(batch, gran))
    return max(tm, gran)


def _run_linear(kernel, x, w_pad, b_pad, out_shape, out_last, tm, cost_estimate):
    batch, state_dim = x.shape
    a_pad = w_pad.shape[1]
    grid_m = pl.cdiv(batch, tm)
    vmem_limit = _vmem_budget_bytes()

    def call(single_buffer_params):
        const_kwargs = (
            dict(pipeline_mode=pl.Buffered(1)) if single_buffer_params else {}
        )
        return pl.pallas_call(
            kernel,
            out_shape=out_shape,
            grid=(grid_m,),
            in_specs=[
                # x tiled over the batch grid (double-buffered by Pallas).
                pl.BlockSpec((tm, state_dim), lambda i: (i, 0)),
                # Grid-invariant weight/bias: single VMEM-resident buffer.
                pl.BlockSpec((state_dim, a_pad), lambda i: (0, 0), **const_kwargs),
                pl.BlockSpec((1, a_pad), lambda i: (0, 0), **const_kwargs),
            ],
            out_specs=pl.BlockSpec((tm, out_last), lambda i: (i, 0)),
            compiler_params=pltpu.CompilerParams(
                dimension_semantics=("parallel",),
                vmem_limit_bytes=vmem_limit,
            ),
            cost_estimate=cost_estimate,
        )(x, w_pad, b_pad)

    try:
        return call(True)
    except Exception:
        # Fallback for JAX versions without pipeline_mode on pallas_call
        # BlockSpecs; only costs a second VMEM buffer for the constant blocks.
        return call(False)


# --------------------------------------------------------------------------
# Public forward passes
# --------------------------------------------------------------------------
def qnetwork_forward(x, w_pad, b_pad, action_dim, *, trim=True):
    """QNetwork.forward: returns Q-values (batch, action_dim) float32.

    With trim=False the lane-padded (batch, A_pad) slab is returned instead
    (padded lanes are exactly 0), letting the consumer slice lazily / fuse the
    downstream reduction rather than paying an extra HBM copy here.
    """
    batch, state_dim = x.shape
    a_pad = w_pad.shape[1]
    tm = _pick_tm(batch, state_dim, a_pad, _vmem_budget_bytes())
    cost = pl.CostEstimate(
        flops=2 * batch * state_dim * a_pad,
        transcendentals=0,
        bytes_accessed=(batch * state_dim * 4 + state_dim * a_pad * 2
                        + a_pad * 4 + batch * a_pad * 4),
    )
    out = _run_linear(
        _qnet_fwd_kernel, x, w_pad, b_pad,
        jax.ShapeDtypeStruct((batch, a_pad), jnp.float32),
        a_pad, tm, cost,
    )
    return out[:, :action_dim] if trim else out


def qnetwork_greedy_action(x, w_pad, b_pad, action_dim):
    """Fused linear + argmax over actions: returns (batch,) int32 actions."""
    batch, state_dim = x.shape
    a_pad = w_pad.shape[1]
    tm = _pick_tm(batch, state_dim, a_pad, _vmem_budget_bytes())
    cost = pl.CostEstimate(
        flops=2 * batch * state_dim * a_pad,
        transcendentals=0,
        bytes_accessed=(batch * state_dim * 4 + state_dim * a_pad * 2
                        + a_pad * 4 + batch * 4),
    )
    kernel = functools.partial(_qnet_greedy_kernel, action_dim=action_dim)
    out = _run_linear(
        kernel, x, w_pad, b_pad,
        jax.ShapeDtypeStruct((batch, 1), jnp.int32),
        1, tm, cost,
    )
    return out[:, 0]


if __name__ == "__main__":
    # Small shapes consistent with the module: state_dim -> action_dim linear map.
    batch, state_dim, action_dim = 8, 16, 4

    key = jax.random.PRNGKey(0)
    kx, kw, kb = jax.random.split(key, 3)

    # Deterministic init mimicking PyTorch nn.Linear default U(-1/sqrt(in), 1/sqrt(in)).
    bound = 1.0 / (state_dim ** 0.5)
    weight = jax.random.uniform(kw, (action_dim, state_dim), jnp.float32, -bound, bound)
    bias = jax.random.uniform(kb, (action_dim,), jnp.float32, -bound, bound)
    x = jax.random.normal(kx, (batch, state_dim), jnp.float32)

    # One-time parameter prep (outside the forward path).
    w_pad, b_pad = prepare_qnetwork_params(weight, bias)

    # Q-values forward (module semantics).
    q = qnetwork_forward(x, w_pad, b_pad, action_dim)
    q = jax.block_until_ready(q)

    # Fused greedy-action variant (argmax in the kernel epilogue).
    act = qnetwork_greedy_action(x, w_pad, b_pad, action_dim)
    act = jax.block_until_ready(act)

    # Reference checks.  bf16 weights/activations with f32 accumulation -> ~1e-2 rel.
    ref = x @ weight.T + bias
    assert q.shape == (batch, action_dim)
    assert jnp.allclose(q, ref, atol=2e-2, rtol=2e-2)
    assert act.shape == (batch,)
    # The fused argmax must agree exactly with argmax of the kernel's own Q output
    # (same bf16 MXU computation, same first-max tie-breaking).
    assert jnp.array_equal(act, jnp.argmax(q, axis=-1))

    print("KERNEL_OK")
</pallas_src>

<mosaic_0001>
module attributes {stable_mosaic.version = 11 : i64} {
  func.func @_qnet_fwd_kernel(%arg0: i32, %arg1: memref<8x16xf32, #tpu.memory_space<vmem>>, %arg2: memref<16x128xbf16, #tpu.memory_space<vmem>>, %arg3: memref<1x128xf32, #tpu.memory_space<vmem>>, %arg4: memref<8x128xf32, #tpu.memory_space<vmem>>) attributes {dimension_semantics = [#tpu.dimension_semantics<parallel>], iteration_bounds = array<i64: 1>, scalar_prefetch = 0 : i64, scratch_operands = 0 : i64, tpu.core_type = #tpu.core_type<tc>, window_params = [{transform_indices = @transform_0, window_bounds = array<i64: 8, 16>}, {pipeline_mode = #tpu.pipeline_mode<synchronous>, transform_indices = @transform_1, window_bounds = array<i64: 16, 128>}, {pipeline_mode = #tpu.pipeline_mode<synchronous>, transform_indices = @transform_2, window_bounds = array<i64: 1, 128>}, {transform_indices = @transform_3, window_bounds = array<i64: 8, 128>}]} {
    %c0 = arith.constant 0 : index
    %c0_0 = arith.constant 0 : index
    %0 = vector.load %arg1[%c0, %c0_0] : memref<8x16xf32, #tpu.memory_space<vmem>>, vector<8x16xf32>
    %1 = arith.truncf %0 : vector<8x16xf32> to vector<8x16xbf16>
    %c0_1 = arith.constant 0 : index
    %c0_2 = arith.constant 0 : index
    %2 = vector.load %arg2[%c0_1, %c0_2] : memref<16x128xbf16, #tpu.memory_space<vmem>>, vector<16x128xbf16>
    %cst = arith.constant dense<0.000000e+00> : vector<8x128xf32>
    %3 = tpu.matmul %1, %2, %cst {dimension_numbers = #tpu.dot_dimension_numbers<[1], [0], [0], [1], [0, 0, 1, 1], [], []>} : vector<8x16xbf16>, vector<16x128xbf16>, vector<8x128xf32> -> vector<8x128xf32>
    %c0_3 = arith.constant 0 : index
    %c0_4 = arith.constant 0 : index
    %4 = vector.load %arg3[%c0_3, %c0_4] : memref<1x128xf32, #tpu.memory_space<vmem>>, vector<1x128xf32>
    %5 = vector.broadcast %4 : vector<1x128xf32> to vector<8x128xf32>
    %6 = arith.addf %3, %5 : vector<8x128xf32>
    %c0_5 = arith.constant 0 : index
    %c0_6 = arith.constant 0 : index
    %7 = vector.load %arg4[%c0_5, %c0_6] : memref<8x128xf32, #tpu.memory_space<vmem>>, vector<8x128xf32>
    tpu.vector_store %arg4[%c0_5, %c0_6], %6 {strides = array<i32>} : memref<8x128xf32, #tpu.memory_space<vmem>>, vector<8x128xf32>,
    return
  }
  func.func @transform_0(%arg0: i32) -> (i32, i32) {
    %c0_i32 = arith.constant 0 : i32
    %c0_i32_0 = arith.constant 0 : i32
    return %arg0, %c0_i32 : i32, i32
  }
  func.func @transform_1(%arg0: i32) -> (i32, i32) {
    %c0_i32 = arith.constant 0 : i32
    %c0_i32_0 = arith.constant 0 : i32
    %c0_i32_1 = arith.constant 0 : i32
    return %c0_i32, %c0_i32_0 : i32, i32
  }
  func.func @transform_2(%arg0: i32) -> (i32, i32) {
    %c0_i32 = arith.constant 0 : i32
    %c0_i32_0 = arith.constant 0 : i32
    %c0_i32_1 = arith.constant 0 : i32
    return %c0_i32, %c0_i32_0 : i32, i32
  }
  func.func @transform_3(%arg0: i32) -> (i32, i32) {
    %c0_i32 = arith.constant 0 : i32
    %c0_i32_0 = arith.constant 0 : i32
    return %arg0, %c0_i32 : i32, i32
  }
}

module attributes {stable_mosaic.version = 11 : i64} {
  func.func @_qnet_fwd_kernel(%arg0: i32, %arg1: memref<8x16xf32, #tpu.memory_space<vmem>>, %arg2: memref<16x128xbf16, #tpu.memory_space<vmem>>, %arg3: memref<1x128xf32, #tpu.memory_space<vmem>>, %arg4: memref<8x128xf32, #tpu.memory_space<vmem>>) attributes {dimension_semantics = [#tpu.dimension_semantics<parallel>], iteration_bounds = array<i64: 1>, scalar_prefetch = 0 : i64, scratch_operands = 0 : i64, tpu.core_type = #tpu.core_type<tc>, window_params = [{transform_indices = @transform_0, window_bounds = array<i64: 8, 16>}, {pipeline_mode = #tpu.pipeline_mode<synchronous>, transform_indices = @transform_1, window_bounds = array<i64: 16, 128>}, {pipeline_mode = #tpu.pipeline_mode<synchronous>, transform_indices = @transform_2, window_bounds = array<i64: 1, 128>}, {transform_indices = @transform_3, window_bounds = array<i64: 8, 128>}]} {
    %c0 = arith.constant 0 : index
    %c0_0 = arith.constant 0 : index
    %0 = vector.load %arg1[%c0, %c0_0] : memref<8x16xf32, #tpu.memory_space<vmem>>, vector<8x16xf32>
    %1 = arith.truncf %0 : vector<8x16xf32> to vector<8x16xbf16>
    %c0_1 = arith.constant 0 : index
    %c0_2 = arith.constant 0 : index
    %2 = vector.load %arg2[%c0_1, %c0_2] : memref<16x128xbf16, #tpu.memory_space<vmem>>, vector<16x128xbf16>
    %cst = arith.constant dense<0.000000e+00> : vector<8x128xf32>
    %3 = tpu.matmul %1, %2, %cst {dimension_numbers = #tpu.dot_dimension_numbers<[1], [0], [0], [1], [0, 0, 1, 1], [], []>} : vector<8x16xbf16>, vector<16x128xbf16>, vector<8x128xf32> -> vector<8x128xf32>
    %c0_3 = arith.constant 0 : index
    %c0_4 = arith.constant 0 : index
    %4 = vector.load %arg3[%c0_3, %c0_4] : memref<1x128xf32, #tpu.memory_space<vmem>>, vector<1x128xf32>
    %5 = vector.broadcast %4 : vector<1x128xf32> to vector<8x128xf32>
    %6 = arith.addf %3, %5 : vector<8x128xf32>
    %c0_5 = arith.constant 0 : index
    %c0_6 = arith.constant 0 : index
    %7 = vector.load %arg4[%c0_5, %c0_6] : memref<8x128xf32, #tpu.memory_space<vmem>>, vector<8x128xf32>
    tpu.vector_store %arg4[%c0_5, %c0_6], %6 {strides = array<i32>} : memref<8x128xf32, #tpu.memory_space<vmem>>, vector<8x128xf32>,
    return
  }
  func.func @transform_0(%arg0: i32) -> (i32, i32) {
    %c0_i32 = arith.constant 0 : i32
    %c0_i32_0 = arith.constant 0 : i32
    return %arg0, %c0_i32 : i32, i32
  }
  func.func @transform_1(%arg0: i32) -> (i32, i32) {
    %c0_i32 = arith.constant 0 : i32
    %c0_i32_0 = arith.constant 0 : i32
    %c0_i32_1 = arith.constant 0 : i32
    return %c0_i32, %c0_i32_0 : i32, i32
  }
  func.func @transform_2(%arg0: i32) -> (i32, i32) {
    %c0_i32 = arith.constant 0 : i32
    %c0_i32_0 = arith.constant 0 : i32
    %c0_i32_1 = arith.constant 0 : i32
    return %c0_i32, %c0_i32_0 : i32, i32
  }
  func.func @transform_3(%arg0: i32) -> (i32, i32) {
    %c0_i32 = arith.constant 0 : i32
    %c0_i32_0 = arith.constant 0 : i32
    return %arg0, %c0_i32 : i32, i32
  }
}

</mosaic_0001>

<bundles_post_ra>
// kernel: tpu_custom_call.1
= control target key start
LH: loop header
LB: loop body
LE: loop exit
PB: predicated region body
PF: predicated region fallthrough
CT: control target
= control target key end

     0   :  { %8 = vsyncpa [#allocation3], 0  ;;  %s244_s0 = inlined_call_operand.hbm [shape: f32[8,16], index: 0, kind: input, shape index: {}]   ;;  %s245_s1 = inlined_call_operand.hbm [shape: bf16[16,128], index: 1, kind: input, shape index: {}]   ;;  %s246_s2 = inlined_call_operand.vmem [shape: f32[1,128], index: 2, kind: input, shape index: {}]   ;;  %s247_s3 = inlined_call_operand.hbm [shape: f32[8,128], index: 3, kind: output, shape index: {}]  }
   0x1   :  { %9 = vsyncpa [#allocation6], 0 }
   0x2   :  { %10 = vsyncpa [#allocation4], 0  ;;  %s205_s12 = smov [#allocation2]   ;;  %s206_s14 = smov [#allocation5]  }
   0x3   :  { %s17_s13 = sshll.u32 %s205_s12, 4  ;;  %s26_s15 = sshll.u32 %s206_s14, 4  ;;  %s18_s13 = int_to_ptr.vmem [resolvable:$true] %s17_s13  ;;  %s27_s15 = int_to_ptr.vmem [resolvable:$true] %s26_s15 }
   0x4   :  { %s147_s16 = scalar_lea.vmem %s18_s13, 128  ;;  %p152_p1 = scmp.lt.s32.totalorder %s18_s13, %s18_s13 }
   0x5   :  { %p148_p0 = scmp.ne.s32.totalorder %s18_s13, %s147_s16  ;;  %p153_p2 = scmp.lt.s32.totalorder %s147_s16, %s147_s16 }
   0x7   :  { %p154_p3 = por %p153_p2, %p152_p1 }
   0x9   :  { %p155_p4 = pnand %p154_p3, %p148_p0 }
   0xb   :  { %158 = shalt.err (!%p155_p4)
}
   0xc   :  { %20 = dma.hbm_to_vmem [thread:$0]  %s244_s0, 128, %s18_s13, [#allocation3]  }
   0xd   :  { %s167_s19 = scalar_lea.vmem %s27_s15, 128  ;;  %p172_p6 = scmp.lt.s32.totalorder %s27_s15, %s27_s15 }
   0xe   :  { %p168_p5 = scmp.ne.s32.totalorder %s27_s15, %s167_s19  ;;  %p173_p7 = scmp.lt.s32.totalorder %s167_s19, %s167_s19 }
  0x10   :  { %p174_p8 = por %p173_p7, %p172_p6 }
  0x12   :  { %p175_p9 = pnand %p174_p8, %p168_p5 }
  0x14   :  { %178 = shalt.err (!%p175_p9)
}
  0x15   :  { %s207_s20 = smov 64   ;;  %s208_s21 = smov 4  }
  0x16   :  { %32 = dma.hbm_to_vmem [thread:$0]  %s245_s1, 128, %s27_s15, [#allocation6], %s207_s20, %s207_s20, %s208_s21  }
  0x17   :  { %199 = dma.done.wait [#allocation3], 128  }
  0x18   :  { %200 = vsyncadd [#allocation3], 4294967168 }
  0x19   :  { %201 = dma.done.wait [#allocation6], 128  }
  0x1a   :  { %202 = vsyncadd [#allocation6], 4294967168  ;;  %v209_v0 = vmov 0.0   ;;  %vm210_vm0 = vmmov 0   ;;  %v138_v1 = vld [vmem:[#allocation5] sm:$0xff]   ;;  %v42_v2 = vld [vmem:[#allocation2] sm:$0xff] }
  0x1b   :  { %125 = vmatprep.subr.bf16.mxu0 %v209_v0  ;;  %127 = vmatprep.mubr.msk.bf16.mxu0 %vm210_vm0, %v209_v0  ;;  %v43_v3 = vpack.c.bf16 %v42_v2, %v42_v2  ;;  %vm59_vm1 = vcmask 130048   ;;  %v120_v4 = vld [vmem:[%s246_s2] ss:$0 sm:$0xff]  ;;  %s211_s25 = smov [#allocation7]  }
  0x1c   :  { %126 = vmatpush3.bf16.msra.mxu0 %v138_v1  ;;  %s110_s1 = sshll.u32 %s211_s25, 4  ;;  %s111_s1 = int_to_ptr.vmem [resolvable:$true] %s110_s1 }
  0x1d   :  { %s179_s26 = scalar_lea.vmem %s111_s1, 128  ;;  %p184_p11 = scmp.lt.s32.totalorder %s111_s1, %s111_s1 }
  0x1e   :  { %p180_p10 = scmp.ne.s32.totalorder %s111_s1, %s179_s26  ;;  %p185_p12 = scmp.lt.s32.totalorder %s179_s26, %s179_s26 }
  0x1f   :  { %128 = vmatmul.mubr.msk.bf16.vlgmr.msra.gmra.mxu0 %vm59_vm1, %v43_v3 }
  0x20   :  { %p186_p13 = por %p185_p12, %p184_p11 }
  0x22   :  { %p187_p0 = pnand %p186_p13, %p180_p10 }
  0xdf   :  { %v97_v5 = vpop.f32.mrf.mxu0 }
  0xe0   :  { %v98_v6 = vadd.f32 %v120_v4, %v97_v5 }
  0xe1   :  { %v129_v7 = vpop.f32.mrf.mxu0 }
  0xe2   :  { %103 = vst [vmem:[#allocation7] sm:$0xff] %v98_v6 }
  0xe3   :  { %v100_v8 = vpop.f32.mrf.mxu0 }
  0xe4   :  { %190 = shalt.err (!%p187_p0)
}
  0xe5   :  { %113 = dma.vmem_to_hbm [thread:$0]  %s111_s1, 128, %s247_s3, [#allocation4]   ;;  %v130_v9 = vpop.f32.mrf.mxu0 }
  0xe6   :  { %203 = dma.done.wait [#allocation4], 128  }
  0xe7   :  { %204 = vsyncadd [#allocation4], 4294967168 }
  0xe8   :  { %117 = vsyncpa [#allocation3], 1 }
  0xe9   :  { %118 = vsyncpa [#allocation6], 1 }
  0xea   :  { %119 = vsyncpa [#allocation4], 1 }

// kernel: tpu_custom_call.1
= control target key start
LH: loop header
LB: loop body
LE: loop exit
PB: predicated region body
PF: predicated region fallthrough
CT: control target
= control target key end

     0   :  { %8 = vsyncpa [#allocation3], 0  ;;  %s244_s0 = inlined_call_operand.hbm [shape: f32[8,16], index: 0, kind: input, shape index: {}]   ;;  %s245_s1 = inlined_call_operand.hbm [shape: bf16[16,128], index: 1, kind: input, shape index: {}]   ;;  %s246_s2 = inlined_call_operand.vmem [shape: f32[1,128], index: 2, kind: input, shape index: {}]   ;;  %s247_s3 = inlined_call_operand.hbm [shape: f32[8,128], index: 3, kind: output, shape index: {}]  }
   0x1   :  { %9 = vsyncpa [#allocation6], 0 }
   0x2   :  { %10 = vsyncpa [#allocation4], 0  ;;  %s205_s12 = smov [#allocation2]   ;;  %s206_s14 = smov [#allocation5]  }
   0x3   :  { %s17_s13 = sshll.u32 %s205_s12, 4  ;;  %s26_s15 = sshll.u32 %s206_s14, 4  ;;  %s18_s13 = int_to_ptr.vmem [resolvable:$true] %s17_s13  ;;  %s27_s15 = int_to_ptr.vmem [resolvable:$true] %s26_s15 }
   0x4   :  { %s147_s16 = scalar_lea.vmem %s18_s13, 128  ;;  %p152_p1 = scmp.lt.s32.totalorder %s18_s13, %s18_s13 }
   0x5   :  { %p148_p0 = scmp.ne.s32.totalorder %s18_s13, %s147_s16  ;;  %p153_p2 = scmp.lt.s32.totalorder %s147_s16, %s147_s16 }
   0x7   :  { %p154_p3 = por %p153_p2, %p152_p1 }
   0x9   :  { %p155_p4 = pnand %p154_p3, %p148_p0 }
   0xb   :  { %158 = shalt.err (!%p155_p4)
}
   0xc   :  { %20 = dma.hbm_to_vmem [thread:$0]  %s244_s0, 128, %s18_s13, [#allocation3]  }
   0xd   :  { %s167_s19 = scalar_lea.vmem %s27_s15, 128  ;;  %p172_p6 = scmp.lt.s32.totalorder %s27_s15, %s27_s15 }
   0xe   :  { %p168_p5 = scmp.ne.s32.totalorder %s27_s15, %s167_s19  ;;  %p173_p7 = scmp.lt.s32.totalorder %s167_s19, %s167_s19 }
  0x10   :  { %p174_p8 = por %p173_p7, %p172_p6 }
  0x12   :  { %p175_p9 = pnand %p174_p8, %p168_p5 }
  0x14   :  { %178 = shalt.err (!%p175_p9)
}
  0x15   :  { %s207_s20 = smov 64   ;;  %s208_s21 = smov 4  }
  0x16   :  { %32 = dma.hbm_to_vmem [thread:$0]  %s245_s1, 128, %s27_s15, [#allocation6], %s207_s20, %s207_s20, %s208_s21  }
  0x17   :  { %199 = dma.done.wait [#allocation3], 128  }
  0x18   :  { %200 = vsyncadd [#allocation3], 4294967168 }
  0x19   :  { %201 = dma.done.wait [#allocation6], 128  }
  0x1a   :  { %202 = vsyncadd [#allocation6], 4294967168  ;;  %v209_v0 = vmov 0.0   ;;  %vm210_vm0 = vmmov 0   ;;  %v138_v1 = vld [vmem:[#allocation5] sm:$0xff]   ;;  %v42_v2 = vld [vmem:[#allocation2] sm:$0xff] }
  0x1b   :  { %125 = vmatprep.subr.bf16.mxu0 %v209_v0  ;;  %127 = vmatprep.mubr.msk.bf16.mxu0 %vm210_vm0, %v209_v0  ;;  %v43_v3 = vpack.c.bf16 %v42_v2, %v42_v2  ;;  %vm59_vm1 = vcmask 130048   ;;  %v120_v4 = vld [vmem:[%s246_s2] ss:$0 sm:$0xff]  ;;  %s211_s25 = smov [#allocation7]  }
  0x1c   :  { %126 = vmatpush3.bf16.msra.mxu0 %v138_v1  ;;  %s110_s1 = sshll.u32 %s211_s25, 4  ;;  %s111_s1 = int_to_ptr.vmem [resolvable:$true] %s110_s1 }
  0x1d   :  { %s179_s26 = scalar_lea.vmem %s111_s1, 128  ;;  %p184_p11 = scmp.lt.s32.totalorder %s111_s1, %s111_s1 }
  0x1e   :  { %p180_p10 = scmp.ne.s32.totalorder %s111_s1, %s179_s26  ;;  %p185_p12 = scmp.lt.s32.totalorder %s179_s26, %s179_s26 }
  0x1f   :  { %128 = vmatmul.mubr.msk.bf16.vlgmr.msra.gmra.mxu0 %vm59_vm1, %v43_v3 }
  0x20   :  { %p186_p13 = por %p185_p12, %p184_p11 }
  0x22   :  { %p187_p0 = pnand %p186_p13, %p180_p10 }
  0xdf   :  { %v97_v5 = vpop.f32.mrf.mxu0 }
  0xe0   :  { %v98_v6 = vadd.f32 %v120_v4, %v97_v5 }
  0xe1   :  { %v129_v7 = vpop.f32.mrf.mxu0 }
  0xe2   :  { %103 = vst [vmem:[#allocation7] sm:$0xff] %v98_v6 }
  0xe3   :  { %v100_v8 = vpop.f32.mrf.mxu0 }
  0xe4   :  { %190 = shalt.err (!%p187_p0)
}
  0xe5   :  { %113 = dma.vmem_to_hbm [thread:$0]  %s111_s1, 128, %s247_s3, [#allocation4]   ;;  %v130_v9 = vpop.f32.mrf.mxu0 }
  0xe6   :  { %203 = dma.done.wait [#allocation4], 128  }
  0xe7   :  { %204 = vsyncadd [#allocation4], 4294967168 }
  0xe8   :  { %117 = vsyncpa [#allocation3], 1 }
  0xe9   :  { %118 = vsyncpa [#allocation6], 1 }
  0xea   :  { %119 = vsyncpa [#allocation4], 1 }

</bundles_post_ra>
